<compile_context>
chip_gen: v6e
topology: v6e:2x2x1
jax: 0.10.0
libtpu: 0.0.40
codegen_flags: <defaults>
</compile_context>

<pallas_src>
import math

import jax
import jax.numpy as jnp
from jax.experimental import pallas as pl
from jax.experimental.pallas import tpu as pltpu

# ---- model hyperparameters (small, consistent with the module) ----
B = 2          # batch
N = 8          # sequence length
DIM = 32       # embedding dim
HEADS = 4
DIM_HEAD = 8
INNER = HEADS * DIM_HEAD          # 32
SCALE = DIM_HEAD ** (-0.5)
# project_out = not (heads == 1 and dim_head == dim) -> True here
# dropout = 0.0 -> identity (nothing to emit)

NEG_BIG = -1e30   # large finite negative for the cross-batch mask (avoids inf-inf NaN)


def attention_kernel(x_ref, wqkv_ref, wo_ref, bout_ref, mask_ref, o_ref):
    # x_ref   : (B*N, DIM)      = (16, 32)   VMEM
    # wqkv_ref: (DIM, 3*INNER)  = (32, 96)   VMEM (SCALE pre-folded into Q columns)
    # wo_ref  : (INNER, DIM)    = (32, 32)   VMEM
    # bout_ref: (1, DIM)        = (1, 32)    VMEM
    # mask_ref: (B*N, B*N)      = (16, 16)   VMEM block-diagonal additive mask
    # o_ref   : (B*N, DIM)      = (16, 32)   VMEM
    xf = x_ref[...]                                                   # (16, 32)
    mask = mask_ref[...]                                              # (16, 16)

    # Single wide QKV projection: one MXU push instead of 12 tiny per-head dots.
    qkv = jnp.dot(xf, wqkv_ref[...], preferred_element_type=jnp.float32)  # (16, 96)

    head_outs = []
    for h in range(HEADS):                       # static, fully unrolled
        q_h = qkv[:, 0 * INNER + h * DIM_HEAD: 0 * INNER + (h + 1) * DIM_HEAD]  # (16, 8)
        k_h = qkv[:, 1 * INNER + h * DIM_HEAD: 1 * INNER + (h + 1) * DIM_HEAD]  # (16, 8)
        v_h = qkv[:, 2 * INNER + h * DIM_HEAD: 2 * INNER + (h + 1) * DIM_HEAD]  # (16, 8)

        # Full-slab scores + block-diagonal mask (no per-batch batched einsums,
        # no explicit k transpose -- contraction is on the last dims).
        scores = jnp.einsum("qd,kd->qk", q_h, k_h,
                            preferred_element_type=jnp.float32) + mask          # (16, 16)

        # Numerically stable softmax; reciprocal-multiply via the EUP slot.
        m = jnp.max(scores, axis=-1, keepdims=True)
        p = jnp.exp(scores - m)
        inv = pl.reciprocal(jnp.sum(p, axis=-1, keepdims=True), approx=True)
        attn = p * inv                                                           # (16, 16)

        # Cross-batch entries of attn are ~0, so one (16,16)@(16,8) matmul is exact.
        head_outs.append(jnp.dot(attn, v_h, preferred_element_type=jnp.float32))  # (16, 8)

    # 'b h n d -> b n (h d)': concatenating heads in order gives h-major, d-minor lanes.
    out_cat = jnp.concatenate(head_outs, axis=-1)                      # (16, 32)

    # Single output projection (K=32 contraction) + bias.
    y = jnp.dot(out_cat, wo_ref[...], preferred_element_type=jnp.float32)  # (16, 32)
    y = y + jnp.broadcast_to(bout_ref[...], y.shape)
    o_ref[...] = y.astype(o_ref.dtype)


def attention_pallas(x, w_qkv, w_out, b_out):
    """x: (B, N, DIM); w_qkv: (DIM, 3*INNER) (in->out, [Q|K|V]); w_out: (INNER, DIM); b_out: (DIM,)."""
    # --- wrapper-side layout plumbing (trace-time, free) ---
    xf = x.reshape(B * N, DIM)                                        # flatten outside the kernel

    # Fold the attention scale into the Q columns of the fused qkv weight.
    wq_scaled = w_qkv[:, 0 * INNER:1 * INNER] * SCALE
    wqkv_fused = jnp.concatenate([wq_scaled, w_qkv[:, INNER:]], axis=1)   # (DIM, 3*INNER)

    b2d = b_out.reshape(1, DIM)

    # Block-diagonal additive mask over the flattened (B*N) axis: 0 within a
    # batch block, -1e30 across batches.
    row_b = jnp.arange(B * N) // N
    mask = jnp.where(row_b[:, None] == row_b[None, :], 0.0, NEG_BIG).astype(jnp.float32)

    yf = pl.pallas_call(
        attention_kernel,
        out_shape=jax.ShapeDtypeStruct((B * N, DIM), x.dtype),
        grid=(1,),                                       # single step: whole problem at once
        in_specs=[
            pl.BlockSpec((B * N, DIM), lambda i: (0, 0)),
            pl.BlockSpec((DIM, 3 * INNER), lambda i: (0, 0)),
            pl.BlockSpec((INNER, DIM), lambda i: (0, 0)),
            pl.BlockSpec((1, DIM), lambda i: (0, 0)),
            pl.BlockSpec((B * N, B * N), lambda i: (0, 0)),
        ],
        out_specs=pl.BlockSpec((B * N, DIM), lambda i: (0, 0)),
        compiler_params=pltpu.CompilerParams(
            dimension_semantics=("arbitrary",)),
    )(xf, wqkv_fused, w_out, b2d, mask)

    return yf.reshape(B, N, DIM)


def attention_reference(x, w_qkv, w_out, b_out):
    """Plain-JAX reference mirroring the PyTorch forward pass exactly."""
    qkv = jnp.einsum("bnd,de->bne", x, w_qkv)
    q, k, v = jnp.split(qkv, 3, axis=-1)

    def to_heads(t):  # 'b n (h d) -> b h n d'
        return t.reshape(B, N, HEADS, DIM_HEAD).transpose(0, 2, 1, 3)

    q, k, v = map(to_heads, (q, k, v))
    dots = jnp.einsum("bhnd,bhmd->bhnm", q, k) * SCALE
    attn = jax.nn.softmax(dots, axis=-1)
    out = jnp.einsum("bhnm,bhmd->bhnd", attn, v)
    out = out.transpose(0, 2, 1, 3).reshape(B, N, INNER)  # 'b h n d -> b n (h d)'
    return jnp.einsum("bne,ed->bnd", out, w_out) + b_out


if __name__ == "__main__":
    key = jax.random.PRNGKey(0)
    kx, kqkv, kwo, kbo = jax.random.split(key, 4)

    x = jax.random.normal(kx, (B, N, DIM), dtype=jnp.float32)

    # Deterministic parameter init (kaiming-uniform-like bounds, matching shapes
    # of nn.Linear weights; stored transposed as (in, out) for direct matmul).
    bound_qkv = 1.0 / math.sqrt(DIM)
    w_qkv = jax.random.uniform(kqkv, (DIM, 3 * INNER), jnp.float32,
                               minval=-bound_qkv, maxval=bound_qkv)
    bound_out = 1.0 / math.sqrt(INNER)
    w_out = jax.random.uniform(kwo, (INNER, DIM), jnp.float32,
                               minval=-bound_out, maxval=bound_out)
    b_out = jax.random.uniform(kbo, (DIM,), jnp.float32,
                               minval=-bound_out, maxval=bound_out)

    y = attention_pallas(x, w_qkv, w_out, b_out)
    y = jax.block_until_ready(y)

    y_ref = attention_reference(x, w_qkv, w_out, b_out)
    assert y.shape == (B, N, DIM)
    # Tolerance accounts for the approximate (EUP) reciprocal in the softmax.
    assert jnp.allclose(y, y_ref, atol=2e-3, rtol=2e-3), "mismatch vs reference"

    print("KERNEL_OK")
</pallas_src>

<mosaic_0001>
module attributes {stable_mosaic.version = 11 : i64} {
  func.func @attention_kernel(%arg0: i32, %arg1: memref<16x32xf32, #tpu.memory_space<vmem>>, %arg2: memref<32x96xf32, #tpu.memory_space<vmem>>, %arg3: memref<32x32xf32, #tpu.memory_space<vmem>>, %arg4: memref<1x32xf32, #tpu.memory_space<vmem>>, %arg5: memref<16x16xf32, #tpu.memory_space<vmem>>, %arg6: memref<16x32xf32, #tpu.memory_space<vmem>>) attributes {dimension_semantics = [#tpu.dimension_semantics<arbitrary>], iteration_bounds = array<i64: 1>, scalar_prefetch = 0 : i64, scratch_operands = 0 : i64, tpu.core_type = #tpu.core_type<tc>, window_params = [{pipeline_mode = #tpu.pipeline_mode<synchronous>, transform_indices = @transform_0, window_bounds = array<i64: 16, 32>}, {pipeline_mode = #tpu.pipeline_mode<synchronous>, transform_indices = @transform_1, window_bounds = array<i64: 32, 96>}, {pipeline_mode = #tpu.pipeline_mode<synchronous>, transform_indices = @transform_2, window_bounds = array<i64: 32, 32>}, {pipeline_mode = #tpu.pipeline_mode<synchronous>, transform_indices = @transform_3, window_bounds = array<i64: 1, 32>}, {pipeline_mode = #tpu.pipeline_mode<synchronous>, transform_indices = @transform_4, window_bounds = array<i64: 16, 16>}, {pipeline_mode = #tpu.pipeline_mode<synchronous>, transform_indices = @transform_5, window_bounds = array<i64: 16, 32>}]} {
    %c0 = arith.constant 0 : index
    %c0_0 = arith.constant 0 : index
    %0 = vector.load %arg1[%c0, %c0_0] : memref<16x32xf32, #tpu.memory_space<vmem>>, vector<16x32xf32>
    %c0_1 = arith.constant 0 : index
    %c0_2 = arith.constant 0 : index
    %1 = vector.load %arg5[%c0_1, %c0_2] : memref<16x16xf32, #tpu.memory_space<vmem>>, vector<16x16xf32>
    %c0_3 = arith.constant 0 : index
    %c0_4 = arith.constant 0 : index
    %2 = vector.load %arg2[%c0_3, %c0_4] : memref<32x96xf32, #tpu.memory_space<vmem>>, vector<32x96xf32>
    %cst = arith.constant dense<0.000000e+00> : vector<16x96xf32>
    %3 = tpu.matmul %0, %2, %cst {dimension_numbers = #tpu.dot_dimension_numbers<[1], [0], [0], [1], [0, 0, 1, 1], [], []>} : vector<16x32xf32>, vector<32x96xf32>, vector<16x96xf32> -> vector<16x96xf32>
    %4 = vector.extract_strided_slice %3 {offsets = [0, 0], sizes = [16, 8], strides = [1, 1]} : vector<16x96xf32> to vector<16x8xf32>
    %5 = vector.extract_strided_slice %3 {offsets = [0, 32], sizes = [16, 8], strides = [1, 1]} : vector<16x96xf32> to vector<16x8xf32>
    %6 = vector.extract_strided_slice %3 {offsets = [0, 64], sizes = [16, 8], strides = [1, 1]} : vector<16x96xf32> to vector<16x8xf32>
    "tpu.trace_start"() <{level = 10 : i32, message = "qd,kd->qk"}> : () -> ()
    %cst_5 = arith.constant dense<0.000000e+00> : vector<16x16xf32>
    %7 = tpu.matmul %4, %5, %cst_5 {dimension_numbers = #tpu.dot_dimension_numbers<[1], [1], [0], [0], [0, 0, 1, 0], [], []>} : vector<16x8xf32>, vector<16x8xf32>, vector<16x16xf32> -> vector<16x16xf32>
    "tpu.trace_stop"() : () -> ()
    %8 = arith.addf %7, %1 : vector<16x16xf32>
    %cst_6 = arith.constant dense<0xFF800000> : vector<16xf32>
    %9 = vector.multi_reduction <maximumf>, %8, %cst_6 [1] : vector<16x16xf32> to vector<16xf32>
    %10 = vector.shape_cast %9 : vector<16xf32> to vector<16x1xf32>
    %11 = vector.broadcast %10 : vector<16x1xf32> to vector<16x16xf32>
    %12 = arith.subf %8, %11 : vector<16x16xf32>
    %13 = math.exp %12 : vector<16x16xf32>
    %cst_7 = arith.constant dense<0.000000e+00> : vector<16xf32>
    %14 = vector.multi_reduction <add>, %13, %cst_7 [1] : vector<16x16xf32> to vector<16xf32>
    %15 = vector.shape_cast %14 : vector<16xf32> to vector<16x1xf32>
    %16 = tpu.reciprocal %15 {approx = true} : vector<16x1xf32> -> vector<16x1xf32>
    %17 = vector.broadcast %16 : vector<16x1xf32> to vector<16x16xf32>
    %18 = arith.mulf %13, %17 : vector<16x16xf32>
    %cst_8 = arith.constant dense<0.000000e+00> : vector<16x8xf32>
    %19 = tpu.matmul %18, %6, %cst_8 {dimension_numbers = #tpu.dot_dimension_numbers<[1], [0], [0], [1], [0, 0, 1, 1], [], []>} : vector<16x16xf32>, vector<16x8xf32>, vector<16x8xf32> -> vector<16x8xf32>
    %20 = vector.extract_strided_slice %3 {offsets = [0, 8], sizes = [16, 8], strides = [1, 1]} : vector<16x96xf32> to vector<16x8xf32>
    %21 = vector.extract_strided_slice %3 {offsets = [0, 40], sizes = [16, 8], strides = [1, 1]} : vector<16x96xf32> to vector<16x8xf32>
    %22 = vector.extract_strided_slice %3 {offsets = [0, 72], sizes = [16, 8], strides = [1, 1]} : vector<16x96xf32> to vector<16x8xf32>
    "tpu.trace_start"() <{level = 10 : i32, message = "qd,kd->qk"}> : () -> ()
    %cst_9 = arith.constant dense<0.000000e+00> : vector<16x16xf32>
    %23 = tpu.matmul %20, %21, %cst_9 {dimension_numbers = #tpu.dot_dimension_numbers<[1], [1], [0], [0], [0, 0, 1, 0], [], []>} : vector<16x8xf32>, vector<16x8xf32>, vector<16x16xf32> -> vector<16x16xf32>
    "tpu.trace_stop"() : () -> ()
    %24 = arith.addf %23, %1 : vector<16x16xf32>
    %cst_10 = arith.constant dense<0xFF800000> : vector<16xf32>
    %25 = vector.multi_reduction <maximumf>, %24, %cst_10 [1] : vector<16x16xf32> to vector<16xf32>
    %26 = vector.shape_cast %25 : vector<16xf32> to vector<16x1xf32>
    %27 = vector.broadcast %26 : vector<16x1xf32> to vector<16x16xf32>
    %28 = arith.subf %24, %27 : vector<16x16xf32>
    %29 = math.exp %28 : vector<16x16xf32>
    %cst_11 = arith.constant dense<0.000000e+00> : vector<16xf32>
    %30 = vector.multi_reduction <add>, %29, %cst_11 [1] : vector<16x16xf32> to vector<16xf32>
    %31 = vector.shape_cast %30 : vector<16xf32> to vector<16x1xf32>
    %32 = tpu.reciprocal %31 {approx = true} : vector<16x1xf32> -> vector<16x1xf32>
    %33 = vector.broadcast %32 : vector<16x1xf32> to vector<16x16xf32>
    %34 = arith.mulf %29, %33 : vector<16x16xf32>
    %cst_12 = arith.constant dense<0.000000e+00> : vector<16x8xf32>
    %35 = tpu.matmul %34, %22, %cst_12 {dimension_numbers = #tpu.dot_dimension_numbers<[1], [0], [0], [1], [0, 0, 1, 1], [], []>} : vector<16x16xf32>, vector<16x8xf32>, vector<16x8xf32> -> vector<16x8xf32>
    %36 = vector.extract_strided_slice %3 {offsets = [0, 16], sizes = [16, 8], strides = [1, 1]} : vector<16x96xf32> to vector<16x8xf32>
    %37 = vector.extract_strided_slice %3 {offsets = [0, 48], sizes = [16, 8], strides = [1, 1]} : vector<16x96xf32> to vector<16x8xf32>
    %38 = vector.extract_strided_slice %3 {offsets = [0, 80], sizes = [16, 8], strides = [1, 1]} : vector<16x96xf32> to vector<16x8xf32>
    "tpu.trace_start"() <{level = 10 : i32, message = "qd,kd->qk"}> : () -> ()
    %cst_13 = arith.constant dense<0.000000e+00> : vector<16x16xf32>
    %39 = tpu.matmul %36, %37, %cst_13 {dimension_numbers = #tpu.dot_dimension_numbers<[1], [1], [0], [0], [0, 0, 1, 0], [], []>} : vector<16x8xf32>, vector<16x8xf32>, vector<16x16xf32> -> vector<16x16xf32>
    "tpu.trace_stop"() : () -> ()
    %40 = arith.addf %39, %1 : vector<16x16xf32>
    %cst_14 = arith.constant dense<0xFF800000> : vector<16xf32>
    %41 = vector.multi_reduction <maximumf>, %40, %cst_14 [1] : vector<16x16xf32> to vector<16xf32>
    %42 = vector.shape_cast %41 : vector<16xf32> to vector<16x1xf32>
    %43 = vector.broadcast %42 : vector<16x1xf32> to vector<16x16xf32>
    %44 = arith.subf %40, %43 : vector<16x16xf32>
    %45 = math.exp %44 : vector<16x16xf32>
    %cst_15 = arith.constant dense<0.000000e+00> : vector<16xf32>
    %46 = vector.multi_reduction <add>, %45, %cst_15 [1] : vector<16x16xf32> to vector<16xf32>
    %47 = vector.shape_cast %46 : vector<16xf32> to vector<16x1xf32>
    %48 = tpu.reciprocal %47 {approx = true} : vector<16x1xf32> -> vector<16x1xf32>
    %49 = vector.broadcast %48 : vector<16x1xf32> to vector<16x16xf32>
    %50 = arith.mulf %45, %49 : vector<16x16xf32>
    %cst_16 = arith.constant dense<0.000000e+00> : vector<16x8xf32>
    %51 = tpu.matmul %50, %38, %cst_16 {dimension_numbers = #tpu.dot_dimension_numbers<[1], [0], [0], [1], [0, 0, 1, 1], [], []>} : vector<16x16xf32>, vector<16x8xf32>, vector<16x8xf32> -> vector<16x8xf32>
    %52 = vector.extract_strided_slice %3 {offsets = [0, 24], sizes = [16, 8], strides = [1, 1]} : vector<16x96xf32> to vector<16x8xf32>
    %53 = vector.extract_strided_slice %3 {offsets = [0, 56], sizes = [16, 8], strides = [1, 1]} : vector<16x96xf32> to vector<16x8xf32>
    %54 = vector.extract_strided_slice %3 {offsets = [0, 88], sizes = [16, 8], strides = [1, 1]} : vector<16x96xf32> to vector<16x8xf32>
    "tpu.trace_start"() <{level = 10 : i32, message = "qd,kd->qk"}> : () -> ()
    %cst_17 = arith.constant dense<0.000000e+00> : vector<16x16xf32>
    %55 = tpu.matmul %52, %53, %cst_17 {dimension_numbers = #tpu.dot_dimension_numbers<[1], [1], [0], [0], [0, 0, 1, 0], [], []>} : vector<16x8xf32>, vector<16x8xf32>, vector<16x16xf32> -> vector<16x16xf32>
    "tpu.trace_stop"() : () -> ()
    %56 = arith.addf %55, %1 : vector<16x16xf32>
    %cst_18 = arith.constant dense<0xFF800000> : vector<16xf32>
    %57 = vector.multi_reduction <maximumf>, %56, %cst_18 [1] : vector<16x16xf32> to vector<16xf32>
    %58 = vector.shape_cast %57 : vector<16xf32> to vector<16x1xf32>
    %59 = vector.broadcast %58 : vector<16x1xf32> to vector<16x16xf32>
    %60 = arith.subf %56, %59 : vector<16x16xf32>
    %61 = math.exp %60 : vector<16x16xf32>
    %cst_19 = arith.constant dense<0.000000e+00> : vector<16xf32>
    %62 = vector.multi_reduction <add>, %61, %cst_19 [1] : vector<16x16xf32> to vector<16xf32>
    %63 = vector.shape_cast %62 : vector<16xf32> to vector<16x1xf32>
    %64 = tpu.reciprocal %63 {approx = true} : vector<16x1xf32> -> vector<16x1xf32>
    %65 = vector.broadcast %64 : vector<16x1xf32> to vector<16x16xf32>
    %66 = arith.mulf %61, %65 : vector<16x16xf32>
    %cst_20 = arith.constant dense<0.000000e+00> : vector<16x8xf32>
    %67 = tpu.matmul %66, %54, %cst_20 {dimension_numbers = #tpu.dot_dimension_numbers<[1], [0], [0], [1], [0, 0, 1, 1], [], []>} : vector<16x16xf32>, vector<16x8xf32>, vector<16x8xf32> -> vector<16x8xf32>
    %68 = tpu.concatenate %19, %35, %51, %67 in 1 : vector<16x8xf32>, vector<16x8xf32>, vector<16x8xf32>, vector<16x8xf32> -> vector<16x32xf32>
    %c0_21 = arith.constant 0 : index
    %c0_22 = arith.constant 0 : index
    %69 = vector.load %arg3[%c0_21, %c0_22] : memref<32x32xf32, #tpu.memory_space<vmem>>, vector<32x32xf32>
    %cst_23 = arith.constant dense<0.000000e+00> : vector<16x32xf32>
    %70 = tpu.matmul %68, %69, %cst_23 {dimension_numbers = #tpu.dot_dimension_numbers<[1], [0], [0], [1], [0, 0, 1, 1], [], []>} : vector<16x32xf32>, vector<32x32xf32>, vector<16x32xf32> -> vector<16x32xf32>
    %c0_24 = arith.constant 0 : index
    %c0_25 = arith.constant 0 : index
    %71 = vector.load %arg4[%c0_24, %c0_25] : memref<1x32xf32, #tpu.memory_space<vmem>>, vector<1x32xf32>
    %72 = vector.shape_cast %71 : vector<1x32xf32> to vector<1x32xf32>
    %73 = vector.broadcast %72 : vector<1x32xf32> to vector<16x32xf32>
    %74 = arith.addf %70, %73 : vector<16x32xf32>
    %c0_26 = arith.constant 0 : index
    %c0_27 = arith.constant 0 : index
    %75 = vector.load %arg6[%c0_26, %c0_27] : memref<16x32xf32, #tpu.memory_space<vmem>>, vector<16x32xf32>
    tpu.vector_store %arg6[%c0_26, %c0_27], %74 {strides = array<i32>} : memref<16x32xf32, #tpu.memory_space<vmem>>, vector<16x32xf32>,
    return
  }
  func.func @transform_0(%arg0: i32) -> (i32, i32) {
    %c0_i32 = arith.constant 0 : i32
    %c0_i32_0 = arith.constant 0 : i32
    %c0_i32_1 = arith.constant 0 : i32
    return %c0_i32, %c0_i32_0 : i32, i32
  }
  func.func @transform_1(%arg0: i32) -> (i32, i32) {
    %c0_i32 = arith.constant 0 : i32
    %c0_i32_0 = arith.constant 0 : i32
    %c0_i32_1 = arith.constant 0 : i32
    return %c0_i32, %c0_i32_0 : i32, i32
  }
  func.func @transform_2(%arg0: i32) -> (i32, i32) {
    %c0_i32 = arith.constant 0 : i32
    %c0_i32_0 = arith.constant 0 : i32
    %c0_i32_1 = arith.constant 0 : i32
    return %c0_i32, %c0_i32_0 : i32, i32
  }
  func.func @transform_3(%arg0: i32) -> (i32, i32) {
    %c0_i32 = arith.constant 0 : i32
    %c0_i32_0 = arith.constant 0 : i32
    %c0_i32_1 = arith.constant 0 : i32
    return %c0_i32, %c0_i32_0 : i32, i32
  }
  func.func @transform_4(%arg0: i32) -> (i32, i32) {
    %c0_i32 = arith.constant 0 : i32
    %c0_i32_0 = arith.constant 0 : i32
    %c0_i32_1 = arith.constant 0 : i32
    return %c0_i32, %c0_i32_0 : i32, i32
  }
  func.func @transform_5(%arg0: i32) -> (i32, i32) {
    %c0_i32 = arith.constant 0 : i32
    %c0_i32_0 = arith.constant 0 : i32
    %c0_i32_1 = arith.constant 0 : i32
    return %c0_i32, %c0_i32_0 : i32, i32
  }
}

</mosaic_0001>

<bundles_post_ra>
// kernel: tpu_custom_call.1
= control target key start
LH: loop header
LB: loop body
LE: loop exit
PB: predicated region body
PF: predicated region fallthrough
CT: control target
= control target key end

     0   :  { %10 = vsyncpa [#allocation3], 0  ;;  %s1616_s0 = inlined_call_operand.hbm [shape: f32[16,32], index: 0, kind: input, shape index: {}]   ;;  %s1617_s1 = inlined_call_operand.hbm [shape: f32[32,96], index: 1, kind: input, shape index: {}]   ;;  %s1618_s2 = inlined_call_operand.hbm [shape: f32[32,32], index: 2, kind: input, shape index: {}]   ;;  %s1619_s3 = inlined_call_operand.vmem [shape: f32[1,32], index: 3, kind: input, shape index: {}]   ;;  %s1620_s4 = inlined_call_operand.hbm [shape: f32[16,16], index: 4, kind: input, shape index: {}]   ;;  %s1621_s5 = inlined_call_operand.hbm [shape: f32[16,32], index: 5, kind: output, shape index: {}]  }
   0x1   :  { %11 = vsyncpa [#allocation6], 0 }
   0x2   :  { %12 = vsyncpa [#allocation9], 0 }
   0x3   :  { %13 = vsyncpa [#allocation4], 0  ;;  %s1421_s18 = smov [#allocation5]   ;;  %s1422_s20 = smov [#allocation2]  }
   0x4   :  { %s31_s19 = sshll.u32 %s1421_s18, 4  ;;  %s19_s21 = sshll.u32 %s1422_s20, 4  ;;  %s32_s19 = int_to_ptr.vmem [resolvable:$true] %s31_s19  ;;  %s20_s21 = int_to_ptr.vmem [resolvable:$true] %s19_s21 }
   0x5   :  { %s1321_s22 = scalar_lea.vmem %s32_s19, 512  ;;  %p1326_p1 = scmp.lt.s32.totalorder %s32_s19, %s32_s19 }
   0x6   :  { %p1322_p0 = scmp.ne.s32.totalorder %s32_s19, %s1321_s22  ;;  %p1327_p2 = scmp.lt.s32.totalorder %s1321_s22, %s1321_s22 }
   0x8   :  { %p1328_p3 = por %p1327_p2, %p1326_p1 }
   0xa   :  { %p1329_p4 = pnand %p1328_p3, %p1322_p0 }
   0xc   :  { %1332 = shalt.err (!%p1329_p4)
}
   0xd   :  { %s1423_s23 = smov 128   ;;  %s1424_s24 = smov 8  }
   0xe   :  { %37 = dma.hbm_to_vmem [thread:$0]  %s1617_s1, 512, %s32_s19, [#allocation6], %s1423_s23, %s1423_s23, %s1424_s24  }
   0xf   :  { %s1341_s27 = scalar_lea.vmem %s20_s21, 256  ;;  %p1346_p6 = scmp.lt.s32.totalorder %s20_s21, %s20_s21 }
  0x10   :  { %p1342_p5 = scmp.ne.s32.totalorder %s20_s21, %s1341_s27  ;;  %p1347_p7 = scmp.lt.s32.totalorder %s1341_s27, %s1341_s27 }
  0x12   :  { %p1348_p8 = por %p1347_p7, %p1346_p6 }
  0x14   :  { %p1349_p9 = pnand %p1348_p8, %p1342_p5 }
  0x16   :  { %1352 = shalt.err (!%p1349_p9)
}
  0x17   :  { %25 = dma.hbm_to_vmem [thread:$0]  %s1616_s0, 256, %s20_s21, [#allocation3], %s1423_s23, %s1423_s23, %s1424_s24  }
  0x18   :  { %s1425_s30 = smov [#allocation7]   ;;  %s1426_s7 = smov [#allocation8]  }
  0x19   :  { %s43_s6 = sshll.u32 %s1425_s30, 4  ;;  %s57_s8 = sshll.u32 %s1426_s7, 4  ;;  %s44_s6 = int_to_ptr.vmem [resolvable:$true] %s43_s6  ;;  %s58_s8 = int_to_ptr.vmem [resolvable:$true] %s57_s8 }
  0x1a   :  { %s1361_s1 = scalar_lea.vmem %s44_s6, 512  ;;  %p1366_p11 = scmp.lt.s32.totalorder %s44_s6, %s44_s6 }
  0x1b   :  { %p1362_p10 = scmp.ne.s32.totalorder %s44_s6, %s1361_s1  ;;  %p1367_p12 = scmp.lt.s32.totalorder %s1361_s1, %s1361_s1 }
  0x1d   :  { %p1368_p13 = por %p1367_p12, %p1366_p11 }
  0x1f   :  { %p1369_p0 = pnand %p1368_p13, %p1362_p10 }
  0x21   :  { %1372 = shalt.err (!%p1369_p0)
}
  0x22   :  { %49 = dma.hbm_to_vmem [thread:$0]  %s1618_s2, 512, %s44_s6, [#allocation6], %s1423_s23, %s1423_s23, %s1424_s24  }
  0x23   :  { %s1381_s0 = scalar_lea.vmem %s58_s8, 256  ;;  %p1386_p2 = scmp.lt.s32.totalorder %s58_s8, %s58_s8 }
  0x24   :  { %p1382_p1 = scmp.ne.s32.totalorder %s58_s8, %s1381_s0  ;;  %p1387_p3 = scmp.lt.s32.totalorder %s1381_s0, %s1381_s0 }
  0x26   :  { %p1388_p4 = por %p1387_p3, %p1386_p2 }
  0x28   :  { %p1389_p5 = pnand %p1388_p4, %p1382_p1 }
  0x2a   :  { %1392 = shalt.err (!%p1389_p5)
}
  0x2b   :  { %63 = dma.hbm_to_vmem [thread:$0]  %s1620_s4, 256, %s58_s8, [#allocation9], %s1423_s23, %s1423_s23, %s1424_s24  }
  0x2c   :  { %1413 = dma.done.wait [#allocation3], 256  }
  0x2d   :  { %1414 = vsyncadd [#allocation3], 4294967040 }
  0x2e   :  { %1415 = dma.done.wait [#allocation6], 1024  }
  0x2f   :  { %1416 = vsyncadd [#allocation6], 4294966272 }
  0x30   :  { %1417 = dma.done.wait [#allocation9], 256  }
  0x31   :  { %1418 = vsyncadd [#allocation9], 4294967040  ;;  %vm84_vm0 = vcmask 261120   ;;  %v83_v0 = vld [vmem:[#allocation5 + $0x18] sm:$0xff]  ;;  %v82_v1 = vld [vmem:[#allocation5 + $0x10] sm:$0xff]  ;;  %vm172_vm1 = vcmask 64512  }
  0x32   :  { %1183 = vmatprep.subr.mxu0 %v83_v0  ;;  %v76_v2 = vld [vmem:[#allocation2] sm:$0xff]  ;;  %v81_v3 = vld [vmem:[#allocation5 + $0x8] sm:$0xff]  ;;  %v80_v4 = vld [vmem:[#allocation5] sm:$0xff]  ;;  %s1427_s2 = smov 96   ;;  %vm256_vm2 = vcmask 130048   ;;  %s1428_s4 = smov 64  }
  0x33   :  { %1184 = vmatpush3.msra.mxu0 %v83_v0  ;;  %1191 = vmatprep.mubr.msk.f32.mxu0 %vm84_vm0, %v76_v2  ;;  %v77_v5 = vld [vmem:[#allocation2 + $0x8] sm:$0xff]  ;;  %v1511_v11 = vld [vmem:[#allocation8] sm:$0xff]  ;;  %v1513_v12 = vld [vmem:[#allocation8 + $0x8] sm:$0xff]  ;;  %s1429_s13 = smov 120   ;;  %s1430_s14 = smov 88   ;;  %vm994_vm3 = vcmask 195584  }
  0x34   :  { %1185 = vmatprep.subr.mxu0 %v82_v1  ;;  %s1431_s15 = smov 56   ;;  %s1432_s16 = smov 80  }
  0x35   :  { %1186 = vmatpush3.msra.mxu0 %v82_v1  ;;  %s1433_s17 = smov 112   ;;  %s1434_s18 = smov 48  }
  0x36   :  { %1187 = vmatprep.subr.mxu0 %v81_v3  ;;  %s1435_s19 = smov 72   ;;  %s1436_s20 = smov 104  }
  0x37   :  { %1188 = vmatpush3.msra.mxu0 %v81_v3  ;;  %s1437_s21 = smov 40   ;;  %s1438_s22 = smov 16  }
  0x38   :  { %1189 = vmatprep.subr.mxu0 %v80_v4  ;;  %s1439_s25 = smov 24   ;;  %s1440_s28 = smov [#allocation10]  }
  0x39   :  { %1190 = vmatpush3.msra.mxu0 %v80_v4  ;;  %s1096_s29 = sshll.u32 %s1440_s28, 4  ;;  %s1097_s29 = int_to_ptr.vmem [resolvable:$true] %s1096_s29 }
  0x3a   :  { %1192 = vmatmul.mubr.msk.f32.vlgmr.msra.gmra.mxu0 %vm84_vm0, %v77_v5  ;;  %s1393_s30 = scalar_lea.vmem %s1097_s29, 256  ;;  %p1398_p7 = scmp.lt.s32.totalorder %s1097_s29, %s1097_s29 }
  0x3b   :  { %p1394_p6 = scmp.ne.s32.totalorder %s1097_s29, %s1393_s30  ;;  %p1399_p8 = scmp.lt.s32.totalorder %s1393_s30, %s1393_s30 }
  0x3d   :  { %p1400_p9 = por %p1399_p8, %p1398_p7 }
  0x3f   :  { %p1401_p10 = pnand %p1400_p9, %p1394_p6 }
  0xfa   :  { %v1497_v6 = vpop.f32.mrf.mxu0 }
  0xfb   :  { %170 = vrot.lane.b32.xlu0 %v1497_v6, %s1427_s2 }
  0xfc   :  { %v1500_v7 = vpop.f32.mrf.mxu0 }
  0xfd   :  { %1198 = vmatprep.mubr.msk.f32.mxu1 %vm172_vm1, %v1500_v7 }
  0xff   :  { %168 = vrot.lane.b32.xlu0 %v1500_v7, %s1427_s2 }
 0x16d   :  { %v171_v8 = vpop.permute.xlu0 %170 }
 0x16e   :  { %1194 = vmatprep.subr.msk.mxu1 %vm172_vm1, %v171_v8 }
 0x16f   :  { %1195 = vmatpush3.xpose.msk.msra.mxu1 %vm172_vm1, %v171_v8 }
 0x171   :  { %v169_v9 = vpop.permute.xlu0 %168 }
 0x172   :  { %1196 = vmatprep.subr.msk.mxu1 %vm172_vm1, %v169_v9 }
 0x173   :  { %1197 = vmatpush3.xpose.msk.msra.mxu1 %vm172_vm1, %v169_v9 }
 0x176   :  { %1199 = vmatmul.mubr.msk.f32.vlgmr.msra.gmra.mxu1 %vm172_vm1, %v1497_v6 }
 0x236   :  { %v1200_v10 = vpop.f32.mrf.mxu1 }
 0x237   :  { %v253_v15 = vadd.f32 %v1200_v10, %v1513_v12 }
 0x238   :  { %v247_v13 = vpop.f32.mrf.mxu1 }
 0x239   :  { %v248_v14 = vadd.f32 %v247_v13, %v1511_v11  ;;  %v260_v17 = vsel %vm256_vm2, %v253_v15, -inf }
 0x23b   :  { %v257_v16 = vsel %vm256_vm2, %v248_v14, -inf }
 0x23c   :  { %258 = vmax.xlane.f32.xlu1 %v257_v16 }
 0x240   :  { %261 = vmax.xlane.f32.xlu1 %v260_v17 }
 0x2c5   :  { %v259_v18 = vpop.xlane.xlu1 %258 }
 0x2c6   :  { %v263_v19 = vsub.f32 %v248_v14, %v259_v18 }
 0x2c8   :  { %v265_v20 = vmul.f32 1.442695, %v263_v19 }
 0x2c9   :  { %v262_v21 = vpop.xlane.xlu1 %261 }
 0x2ca   :  { %1281 = vpow2.f32 %v265_v20  ;;  %v264_v22 = vsub.f32 %v253_v15, %v262_v21 }
 0x2cc   :  { %v267_v23 = vmul.f32 1.442695, %v264_v22 }
 0x2ce   :  { %1283 = vpow2.f32 %v267_v23 }
 0x2d7   :  { %v1282_v24 = vpop.eup %1281 }
 0x2d8   :  { %v269_v25 = vsel %vm256_vm2, %v1282_v24, 0.0 }
 0x2d9   :  { %270 = vadd.xlane.f32.xlu0 %v269_v25 }
 0x2db   :  { %v1284_v26 = vpop.eup %1283 }
 0x2dc   :  { %v272_v27 = vsel %vm256_vm2, %v1284_v26, 0.0 }
 0x2dd   :  { %273 = vadd.xlane.f32.xlu1 %v272_v27 }
 0x2ee   :  { %281 = vrot.lane.b32.xlu1 %v1497_v6, %s1428_s4 }
 0x2ef   :  { %366 = vrot.lane.b32.xlu0 %v1500_v7, %s1429_s13 }
 0x2f2   :  { %279 = vrot.lane.b32.xlu1 %v1500_v7, %s1428_s4 }
 0x2f6   :  { %372 = vrot.lane.b32.xlu1 %v1497_v6, %s1430_s14 }
 0x2fa   :  { %370 = vrot.lane.b32.xlu1 %v1500_v7, %s1430_s14 }
 0x2fe   :  { %368 = vrot.lane.b32.xlu1 %v1497_v6, %s1429_s13 }
 0x362   :  { %v271_v28 = vpop.xlane.xlu0 %270 }
 0x363   :  { %1285 = vrcp.f32 %v271_v28 }
 0x366   :  { %v274_v29 = vpop.xlane.xlu1 %273  ;;  %v367_v38 = vpop.permute.xlu0 %366 }
 0x367   :  { %1287 = vrcp.f32 %v274_v29 }
 0x36a   :  { %v282_v30 = vpop.permute.xlu1 %281 }
 0x36b   :  { %1201 = vmatprep.subr.mxu1 %v282_v30 }
 0x36c   :  { %1202 = vmatpush3.msra.mxu1 %v282_v30 }
 0x36e   :  { %v280_v31 = vpop.permute.xlu1 %279 }
 0x36f   :  { %1203 = vmatprep.subr.mxu1 %v280_v31 }
 0x370   :  { %v1286_v32 = vpop.eup %1285  ;;  %1204 = vmatpush3.msra.mxu1 %v280_v31 }
 0x371   :  { %v277_v33 = vmul.f32 %v1286_v32, %v1282_v24 }
 0x372   :  { %v373_v34 = vpop.permute.xlu1 %372 }
 0x373   :  { %1205 = vmatprep.mubr.msk.f32.mxu1 %vm256_vm2, %v277_v33  ;;  %1208 = vmatprep.subr.msk.mxu1 %vm172_vm1, %v373_v34 }
 0x374   :  { %v1288_v35 = vpop.eup %1287 }
 0x375   :  { %v278_v36 = vmul.f32 %v1288_v35, %v1284_v26 }
 0x376   :  { %v371_v37 = vpop.permute.xlu1 %370 }
 0x377   :  { %1206 = vmatmul.mubr.msk.f32.vlgmr.msra.gmra.mxu1 %vm256_vm2, %v278_v36 }
 0x378   :  { %1209 = vmatpush3.xpose.msk.msra.mxu1 %vm172_vm1, %v373_v34  ;;  %1212 = vmatprep.mubr.msk.f32.mxu1 %vm172_vm1, %v367_v38 }
 0x379   :  { %1210 = vmatprep.subr.msk.mxu1 %vm172_vm1, %v371_v37 }
 0x37a   :  { %v369_v39 = vpop.permute.xlu1 %368 }
 0x37c   :  { %1211 = vmatpush3.xpose.msk.msra.mxu1 %vm172_vm1, %v371_v37 }
 0x37f   :  { %1213 = vmatmul.mubr.msk.f32.vlgmr.msra.gmra.mxu1 %vm172_vm1, %v369_v39 }
 0x437   :  { %v1535_v40 = vpop.f32.mrf.mxu1 }
 0x439   :  { %v1537_v41 = vpop.f32.mrf.mxu1 }
 0x43f   :  { %v1214_v42 = vpop.f32.mrf.mxu1 }
 0x440   :  { %v454_v43 = vadd.f32 %v1214_v42, %v1513_v12 }
 0x441   :  { %v448_v44 = vpop.f32.mrf.mxu1 }
 0x442   :  { %v449_v45 = vadd.f32 %v448_v44, %v1511_v11  ;;  %v460_v46 = vsel %vm256_vm2, %v454_v43, -inf }
 0x443   :  { %461 = vmax.xlane.f32.xlu0 %v460_v46 }
 0x444   :  { %v457_v47 = vsel %vm256_vm2, %v449_v45, -inf }
 0x445   :  { %458 = vmax.xlane.f32.xlu1 %v457_v47 }
 0x456   :  { %481 = vrot.lane.b32.xlu1 %v1497_v6, %s1431_s15 }
 0x459   :  { %479 = vrot.lane.b32.xlu0 %v1500_v7, %s1431_s15 }
 0x45a   :  { %572 = vrot.lane.b32.xlu1 %v1497_v6, %s1432_s16 }
 0x45d   :  { %566 = vrot.lane.b32.xlu0 %v1500_v7, %s1433_s17 }
 0x45e   :  { %570 = vrot.lane.b32.xlu1 %v1500_v7, %s1432_s16 }
 0x4cc   :  { %v462_v48 = vpop.xlane.xlu0 %461 }
 0x4cd   :  { %v464_v49 = vsub.f32 %v454_v43, %v462_v48 }
 0x4ce   :  { %v459_v50 = vpop.xlane.xlu1 %458 }
 0x4cf   :  { %v467_v51 = vmul.f32 1.442695, %v464_v49  ;;  %v463_v52 = vsub.f32 %v449_v45, %v459_v50 }
 0x4d0   :  { %v480_v55 = vpop.permute.xlu0 %479 }
 0x4d1   :  { %1289 = vpow2.f32 %v467_v51  ;;  %v465_v53 = vmul.f32 1.442695, %v463_v52 }
 0x4d2   :  { %v482_v54 = vpop.permute.xlu1 %481 }
 0x4d3   :  { %1291 = vpow2.f32 %v465_v53  ;;  %1215 = vmatprep.subr.mxu0 %v482_v54 }
 0x4d4   :  { %1216 = vmatpush3.msra.mxu0 %v482_v54  ;;  %v567_v4 = vpop.permute.xlu0 %566 }
 0x4d5   :  { %1217 = vmatprep.subr.mxu0 %v480_v55 }
 0x4d6   :  { %1218 = vmatpush3.msra.mxu0 %v480_v55  ;;  %v573_v56 = vpop.permute.xlu1 %572 }
 0x4d7   :  { %1222 = vmatprep.subr.msk.mxu0 %vm172_vm1, %v573_v56 }
 0x4da   :  { %v571_v61 = vpop.permute.xlu1 %570 }
 0x4de   :  { %v1290_v57 = vpop.eup %1289 }
 0x4df   :  { %v472_v58 = vsel %vm256_vm2, %v1290_v57, 0.0 }
 0x4e0   :  { %v1292_v59 = vpop.eup %1291  ;;  %473 = vadd.xlane.f32.xlu1 %v472_v58 }
 0x4e1   :  { %v469_v60 = vsel %vm256_vm2, %v1292_v59, 0.0 }
 0x4e4   :  { %470 = vadd.xlane.f32.xlu1 %v469_v60 }
 0x4f5   :  { %568 = vrot.lane.b32.xlu1 %v1497_v6, %s1433_s17 }
 0x569   :  { %v474_v62 = vpop.xlane.xlu1 %473 }
 0x56a   :  { %1293 = vrcp.f32 %v474_v62 }
 0x56d   :  { %v471_v63 = vpop.xlane.xlu1 %470 }
 0x56e   :  { %1295 = vrcp.f32 %v471_v63 }
 0x571   :  { %v569_v5 = vpop.permute.xlu1 %568 }
 0x577   :  { %v1294_v0 = vpop.eup %1293 }
 0x578   :  { %v478_v3 = vmul.f32 %v1294_v0, %v1290_v57 }
 0x57b   :  { %v1296_v1 = vpop.eup %1295 }
 0x57c   :  { %v477_v2 = vmul.f32 %v1296_v1, %v1292_v59  ;;  %v1000_v1 = vld [vmem:[#allocation7 + $0x18] sm:$0xff] }
 0x57e   :  { %1219 = vmatprep.mubr.msk.f32.mxu0 %vm256_vm2, %v477_v2  ;;  %v999_v2 = vld [vmem:[#allocation7 + $0x10] sm:$0xff] }
 0x57f   :  { %1220 = vmatmul.mubr.msk.f32.vlgmr.msra.gmra.mxu0 %vm256_vm2, %v478_v3  ;;  %v997_v3 = vld [vmem:[#allocation7] sm:$0xff] }
 0x580   :  { %1223 = vmatpush3.xpose.msk.msra.mxu0 %vm172_vm1, %v573_v56  ;;  %1226 = vmatprep.mubr.msk.f32.mxu0 %vm172_vm1, %v567_v4 }
 0x581   :  { %1224 = vmatprep.subr.msk.mxu0 %vm172_vm1, %v571_v61 }
 0x584   :  { %1225 = vmatpush3.xpose.msk.msra.mxu0 %vm172_vm1, %v571_v61 }
 0x587   :  { %1227 = vmatmul.mubr.msk.f32.vlgmr.msra.gmra.mxu0 %vm172_vm1, %v569_v5 }
 0x63f   :  { %v1559_v8 = vpop.f32.mrf.mxu0 }
 0x641   :  { %v1561_v9 = vpop.f32.mrf.mxu0 }
 0x647   :  { %v1228_v10 = vpop.f32.mrf.mxu0 }
 0x648   :  { %v654_v13 = vadd.f32 %v1228_v10, %v1513_v12 }
 0x649   :  { %v648_v14 = vpop.f32.mrf.mxu0 }
 0x64a   :  { %v649_v15 = vadd.f32 %v648_v14, %v1511_v11  ;;  %v660_v16 = vsel %vm256_vm2, %v654_v13, -inf }
 0x64b   :  { %661 = vmax.xlane.f32.xlu1 %v660_v16 }
 0x64c   :  { %v657_v17 = vsel %vm256_vm2, %v649_v15, -inf }
 0x64d   :  { %658 = vmax.xlane.f32.xlu0 %v657_v17 }
 0x65c   :  { %681 = vrot.lane.b32.xlu1 %v1497_v6, %s1434_s18 }
 0x660   :  { %772 = vrot.lane.b32.xlu1 %v1497_v6, %s1435_s19 }
 0x664   :  { %770 = vrot.lane.b32.xlu1 %v1500_v7, %s1435_s19 }
 0x668   :  { %768 = vrot.lane.b32.xlu1 %v1497_v6, %s1436_s20 }
 0x6d4   :  { %v662_v18 = vpop.xlane.xlu1 %661 }
 0x6d5   :  { %v664_v19 = vsub.f32 %v654_v13, %v662_v18 }
 0x6d6   :  { %v659_v20 = vpop.xlane.xlu0 %658 }
 0x6d7   :  { %v667_v21 = vmul.f32 1.442695, %v664_v19  ;;  %v663_v22 = vsub.f32 %v649_v15, %v659_v20 }
 0x6d8   :  { %v682_v23 = vpop.permute.xlu1 %681 }
 0x6d9   :  { %1297 = vpow2.f32 %v667_v21  ;;  %v665_v24 = vmul.f32 1.442695, %v663_v22  ;;  %1229 = vmatprep.subr.mxu1 %v682_v23 }
 0x6da   :  { %1230 = vmatpush3.msra.mxu1 %v682_v23 }
 0x6db   :  { %1299 = vpow2.f32 %v665_v24 }
 0x6dc   :  { %v773_v32 = vpop.permute.xlu1 %772 }
 0x6e0   :  { %v771_v38 = vpop.permute.xlu1 %770 }
 0x6e4   :  { %v769_v39 = vpop.permute.xlu1 %768 }
 0x6e6   :  { %v1298_v25 = vpop.eup %1297 }
 0x6e7   :  { %v672_v26 = vsel %vm256_vm2, %v1298_v25, 0.0 }
 0x6e8   :  { %v1300_v27 = vpop.eup %1299  ;;  %673 = vadd.xlane.f32.xlu0 %v672_v26 }
 0x6e9   :  { %v669_v28 = vsel %vm256_vm2, %v1300_v27, 0.0 }
 0x6ec   :  { %670 = vadd.xlane.f32.xlu0 %v669_v28 }
 0x702   :  { %679 = vrot.lane.b32.xlu0 %v1500_v7, %s1434_s18 }
 0x706   :  { %766 = vrot.lane.b32.xlu0 %v1500_v7, %s1436_s20 }
 0x771   :  { %v674_v29 = vpop.xlane.xlu0 %673 }
 0x772   :  { %1301 = vrcp.f32 %v674_v29 }
 0x775   :  { %v671_v30 = vpop.xlane.xlu0 %670 }
 0x776   :  { %1303 = vrcp.f32 %v671_v30 }
 0x779   :  { %v680_v31 = vpop.permute.xlu0 %679 }
 0x77a   :  { %1231 = vmatprep.subr.mxu1 %v680_v31 }
 0x77b   :  { %1232 = vmatpush3.msra.mxu1 %v680_v31 }
 0x77c   :  { %1236 = vmatprep.subr.msk.mxu1 %vm172_vm1, %v773_v32 }
 0x77d   :  { %v767_v37 = vpop.permute.xlu0 %766 }
 0x77f   :  { %v1302_v33 = vpop.eup %1301 }
 0x780   :  { %v678_v36 = vmul.f32 %v1302_v33, %v1298_v25 }
 0x783   :  { %v1304_v34 = vpop.eup %1303 }
 0x784   :  { %v677_v35 = vmul.f32 %v1304_v34, %v1300_v27 }
 0x786   :  { %1233 = vmatprep.mubr.msk.f32.mxu1 %vm256_vm2, %v677_v35 }
 0x787   :  { %1234 = vmatmul.mubr.msk.f32.vlgmr.msra.gmra.mxu1 %vm256_vm2, %v678_v36 }
 0x788   :  { %1237 = vmatpush3.xpose.msk.msra.mxu1 %vm172_vm1, %v773_v32  ;;  %1240 = vmatprep.mubr.msk.f32.mxu1 %vm172_vm1, %v767_v37 }
 0x789   :  { %1238 = vmatprep.subr.msk.mxu1 %vm172_vm1, %v771_v38 }
 0x78c   :  { %1239 = vmatpush3.xpose.msk.msra.mxu1 %vm172_vm1, %v771_v38 }
 0x78f   :  { %1241 = vmatmul.mubr.msk.f32.vlgmr.msra.gmra.mxu1 %vm172_vm1, %v769_v39 }
 0x847   :  { %v1235_v42 = vpop.f32.mrf.mxu1 }
 0x849   :  { %v757_v43 = vpop.f32.mrf.mxu1 }
 0x84f   :  { %v1242_v44 = vpop.f32.mrf.mxu1 }
 0x850   :  { %v854_v45 = vadd.f32 %v1242_v44, %v1513_v12 }
 0x851   :  { %v848_v46 = vpop.f32.mrf.mxu1 }
 0x852   :  { %v849_v47 = vadd.f32 %v848_v46, %v1511_v11  ;;  %v860_v48 = vsel %vm256_vm2, %v854_v45, -inf }
 0x853   :  { %861 = vmax.xlane.f32.xlu1 %v860_v48 }
 0x854   :  { %v857_v49 = vsel %vm256_vm2, %v849_v47, -inf }
 0x855   :  { %858 = vmax.xlane.f32.xlu0 %v857_v49 }
 0x864   :  { %881 = vrot.lane.b32.xlu1 %v1497_v6, %s1437_s21 }
 0x868   :  { %968 = vrot.lane.b32.xlu1 %v1561_v9, %s1424_s24 }
 0x86c   :  { %970 = vrot.lane.b32.xlu1 %v1559_v8, %s1424_s24 }
 0x870   :  { %978 = vrot.lane.b32.xlu1 %v1235_v42, %s1438_s22 }
 0x8dc   :  { %v862_v12 = vpop.xlane.xlu1 %861 }
 0x8dd   :  { %v864_v50 = vsub.f32 %v854_v45, %v862_v12 }
 0x8de   :  { %v859_v11 = vpop.xlane.xlu0 %858 }
 0x8df   :  { %v867_v51 = vmul.f32 1.442695, %v864_v50  ;;  %v863_v52 = vsub.f32 %v849_v47, %v859_v11 }
 0x8e0   :  { %v882_v53 = vpop.permute.xlu1 %881 }
 0x8e1   :  { %1305 = vpow2.f32 %v867_v51  ;;  %v865_v54 = vmul.f32 1.442695, %v863_v52  ;;  %1243 = vmatprep.subr.mxu0 %v882_v53 }
 0x8e2   :  { %1244 = vmatpush3.msra.mxu0 %v882_v53 }
 0x8e3   :  { %1307 = vpow2.f32 %v865_v54 }
 0x8e4   :  { %v969_v8 = vpop.permute.xlu1 %968 }
 0x8e5   :  { %v990_v14 = vsel %vm172_vm1, %v1537_v41, %v969_v8  ;;  %v1136_v41 = vld [vmem:[%s1619_s3] ss:$0 sm:$0xff] }
 0x8e8   :  { %v971_v9 = vpop.permute.xlu1 %970 }
 0x8e9   :  { %v991_v16 = vsel %vm172_vm1, %v1535_v40, %v971_v9 }
 0x8ec   :  { %v979_v10 = vpop.permute.xlu1 %978 }
 0x8ed   :  { %v993_v19 = vsel %vm256_vm2, %v991_v16, %v979_v10 }
 0x8ee   :  { %v1306_v6 = vpop.eup %1305 }
 0x8ef   :  { %v872_v55 = vsel %vm256_vm2, %v1306_v6, 0.0 }
 0x8f0   :  { %v1308_v56 = vpop.eup %1307  ;;  %873 = vadd.xlane.f32.xlu0 %v872_v55 }
 0x8f1   :  { %v869_v57 = vsel %vm256_vm2, %v1308_v56, 0.0 }
 0x8f4   :  { %870 = vadd.xlane.f32.xlu0 %v869_v57 }
 0x90a   :  { %879 = vrot.lane.b32.xlu0 %v1500_v7, %s1437_s21  ;;  %v998_v7 = vld [vmem:[#allocation7 + $0x8] sm:$0xff] }
 0x90e   :  { %976 = vrot.lane.b32.xlu0 %v757_v43, %s1438_s22 }
 0x979   :  { %v874_v58 = vpop.xlane.xlu0 %873 }
 0x97a   :  { %1309 = vrcp.f32 %v874_v58 }
 0x97d   :  { %v871_v59 = vpop.xlane.xlu0 %870 }
 0x97e   :  { %1311 = vrcp.f32 %v871_v59 }
 0x981   :  { %v880_v60 = vpop.permute.xlu0 %879 }
 0x982   :  { %1245 = vmatprep.subr.mxu0 %v880_v60 }
 0x983   :  { %1246 = vmatpush3.msra.mxu0 %v880_v60 }
 0x984   :  { %1250 = vmatprep.subr.mxu0 %v1000_v1 }
 0x985   :  { %v977_v13 = vpop.permute.xlu0 %976 }
 0x986   :  { %v992_v17 = vsel %vm256_vm2, %v990_v14, %v977_v13 }
 0x987   :  { %v1310_v61 = vpop.eup %1309 }
 0x988   :  { %v878_v0 = vmul.f32 %v1310_v61, %v1306_v6 }
 0x98b   :  { %v1312_v62 = vpop.eup %1311 }
 0x98c   :  { %v877_v63 = vmul.f32 %v1312_v62, %v1308_v56 }
 0x98e   :  { %1247 = vmatprep.mubr.msk.f32.mxu0 %vm256_vm2, %v877_v63 }
 0x98f   :  { %1248 = vmatmul.mubr.msk.f32.vlgmr.msra.gmra.mxu0 %vm256_vm2, %v878_v0 }
 0x990   :  { %1251 = vmatpush3.msra.mxu0 %v1000_v1 }
 0x991   :  { %1252 = vmatprep.subr.mxu0 %v999_v2 }
 0x992   :  { %1253 = vmatpush3.msra.mxu0 %v999_v2 }
 0x993   :  { %1254 = vmatprep.subr.mxu0 %v998_v7 }
 0x994   :  { %1255 = vmatpush3.msra.mxu0 %v998_v7 }
 0x995   :  { %1256 = vmatprep.subr.mxu0 %v997_v3 }
 0x996   :  { %1257 = vmatpush3.msra.mxu0 %v997_v3 }
 0xa4f   :  { %v1249_v4 = vpop.f32.mrf.mxu0 }
 0xa50   :  { %986 = vrot.lane.b32.xlu1 %v1249_v4, %s1439_s25 }
 0xa51   :  { %v957_v5 = vpop.f32.mrf.mxu0 }
 0xa52   :  { %984 = vrot.lane.b32.xlu0 %v957_v5, %s1439_s25 }
 0xac2   :  { %v987_v15 = vpop.permute.xlu1 %986 }
 0xac3   :  { %v996_v21 = vsel %vm994_vm3, %v993_v19, %v987_v15 }
 0xac4   :  { %v985_v18 = vpop.permute.xlu0 %984 }
 0xac5   :  { %v995_v20 = vsel %vm994_vm3, %v992_v17, %v985_v18 }
 0xac6   :  { %1258 = vmatprep.mubr.msk.f32.mxu0 %vm84_vm0, %v995_v20 }
 0xac7   :  { %1259 = vmatmul.mubr.msk.f32.vlgmr.msra.gmra.mxu0 %vm84_vm0, %v996_v21 }
 0xb87   :  { %v1260_v22 = vpop.f32.mrf.mxu0 }
 0xb88   :  { %v1086_v23 = vadd.f32 %v1260_v22, %v1136_v41 }
 0xb89   :  { %v1080_v40 = vpop.f32.mrf.mxu0 }
 0xb8a   :  { %1090 = vst.msk [vmem:[#allocation10 + $0x8] sm:$0xff] %vm84_vm0, %v1086_v23  ;;  %v1081_v24 = vadd.f32 %v1136_v41, %v1080_v40 }
 0xb8c   :  { %1089 = vst.msk [vmem:[#allocation10] sm:$0xff] %vm84_vm0, %v1081_v24 }
 0xb8d   :  { %1404 = shalt.err (!%p1401_p10)
}
 0xb8e   :  { %1102 = dma.vmem_to_hbm [thread:$0]  %s1097_s29, 256, %s1621_s5, [#allocation4], %s1423_s23, %s1423_s23, %s1424_s24  }
 0xb8f   :  { %1419 = dma.done.wait [#allocation4], 256  }
 0xb90   :  { %1420 = vsyncadd [#allocation4], 4294967040 }
 0xb91   :  { %1106 = vsyncpa [#allocation3], 1 }
 0xb92   :  { %1107 = vsyncpa [#allocation6], 1 }
 0xb93   :  { %1108 = vsyncpa [#allocation9], 1 }
 0xb94   :  { %1109 = vsyncpa [#allocation4], 1 }

</bundles_post_ra>
